<compile_context>
chip_gen: v6e
topology: v6e:2x2x1
jax: 0.10.0
libtpu: 0.0.40
codegen_flags: <defaults>
</compile_context>

<pallas_src>
import jax
import jax.numpy as jnp
from jax.experimental import pallas as pl
from jax.experimental.pallas import tpu as pltpu


def mlp_kernel(x_ref, w1_ref, b1_ref, w2_ref, b2_ref, o_ref):
    # Layer 1 on the MXU: (TB, D_in) @ (D_in, H), f32 accumulation.
    h = jnp.dot(x_ref[...], w1_ref[...], preferred_element_type=jnp.float32)
    h = jnp.maximum(h + b1_ref[...].astype(jnp.float32), 0.0)          # ReLU
    # Layer 2 (H -> 1) on the VPU/XLU: row-dot with w2 (avoid N=1 MXU matmul).
    o = jnp.sum(h * w2_ref[...].astype(jnp.float32), axis=-1)          # (TB,)
    # Lane-dense store: batch maps to the 128-wide lane axis of a (1, TB) slab.
    o_ref[...] = (o[None, :] + b2_ref[0]).astype(o_ref.dtype)


def mlp_forward(x, w1, b1, w2, b2, *, block_rows=512):
    """x: (B, D_in); w1: (D_in, H); b1: (H,); w2: (H, 1); b2: (1,)."""
    B, d_in = x.shape
    h_dim = w1.shape[1]
    d_out = w2.shape[1]
    assert d_out == 1, "fused VPU second layer assumes output_dim == 1"

    # Batch tiling: big aligned tiles for large B, a single full block otherwise.
    # Pad B so it divides evenly; padded rows are junk and sliced off after.
    if B >= block_rows:
        tb = block_rows
    else:
        tb = max(8, ((B + 7) // 8) * 8)
    b_pad = ((B + tb - 1) // tb) * tb
    x_p = x if b_pad == B else jnp.pad(x, ((0, b_pad - B), (0, 0)))
    num_tiles = b_pad // tb

    b1_row = b1.reshape(1, h_dim)
    w2_row = w2.reshape(1, h_dim)                 # (H, 1) -> (1, H)
    b2_s = b2.reshape(1).astype(jnp.float32)      # scalar, lives in SMEM

    out_t = pl.pallas_call(
        mlp_kernel,
        out_shape=jax.ShapeDtypeStruct((1, b_pad), x.dtype),
        grid=(num_tiles,),
        in_specs=[
            pl.BlockSpec((tb, d_in), lambda i: (i, 0)),          # x: new tile per step
            pl.BlockSpec((d_in, h_dim), lambda i: (0, 0)),       # W1: VMEM-resident
            pl.BlockSpec((1, h_dim), lambda i: (0, 0)),          # b1: VMEM-resident
            pl.BlockSpec((1, h_dim), lambda i: (0, 0)),          # w2 row: VMEM-resident
            pl.BlockSpec(memory_space=pltpu.MemorySpace.SMEM),   # b2 scalar
        ],
        out_specs=pl.BlockSpec((1, tb), lambda i: (0, i)),       # lane-dense output
        compiler_params=pltpu.CompilerParams(
            dimension_semantics=("parallel",),                   # megacore split on v7x
        ),
    )(x_p, w1, b1_row, w2_row, b2_s)

    return out_t[0, :B].reshape(B, d_out)


def mlp_reference(x, w1, b1, w2, b2):
    h = jnp.maximum(jnp.dot(x, w1, preferred_element_type=jnp.float32) + b1[None, :], 0.0)
    return jnp.sum(h * w2.reshape(1, -1), axis=-1, keepdims=True) + b2[None, :]


def init_params(key, input_dim=64, hidden_dim=16, output_dim=1):
    """torch.nn.Linear-style uniform(-1/sqrt(fan_in), 1/sqrt(fan_in)) init.
    Weights stored pre-transposed as (in_features, out_features)."""
    k1, k2, k3, k4 = jax.random.split(key, 4)
    bound1 = 1.0 / (input_dim ** 0.5)
    bound2 = 1.0 / (hidden_dim ** 0.5)
    w1 = jax.random.uniform(k1, (input_dim, hidden_dim), jnp.float32, -bound1, bound1)
    b1 = jax.random.uniform(k2, (hidden_dim,), jnp.float32, -bound1, bound1)
    w2 = jax.random.uniform(k3, (hidden_dim, output_dim), jnp.float32, -bound2, bound2)
    b2 = jax.random.uniform(k4, (output_dim,), jnp.float32, -bound2, bound2)
    return w1, b1, w2, b2


if __name__ == "__main__":
    input_dim, hidden_dim, output_dim = 64, 16, 1
    key = jax.random.PRNGKey(0)
    kx, kb, kp = jax.random.split(key, 3)
    w1, b1, w2, b2 = init_params(kp, input_dim, hidden_dim, output_dim)

    # Small batch: single full block, grid = 1.
    x_small = jax.random.normal(kx, (8, input_dim), dtype=jnp.float32)
    out_small = jax.block_until_ready(mlp_forward(x_small, w1, b1, w2, b2))
    ref_small = mlp_reference(x_small, w1, b1, w2, b2)
    assert out_small.shape == (8, output_dim)
    assert jnp.allclose(out_small, ref_small, atol=5e-3, rtol=5e-3)

    # Larger batch: exercises the pipelined 512-row grid (3 steps) + row padding.
    x_big = jax.random.normal(kb, (1152, input_dim), dtype=jnp.float32)
    out_big = jax.block_until_ready(mlp_forward(x_big, w1, b1, w2, b2))
    ref_big = mlp_reference(x_big, w1, b1, w2, b2)
    assert out_big.shape == (1152, output_dim)
    assert jnp.allclose(out_big, ref_big, atol=5e-3, rtol=5e-3)

    print("KERNEL_OK")
</pallas_src>

<mosaic_0001>
module attributes {stable_mosaic.version = 11 : i64} {
  func.func @mlp_kernel(%arg0: i32, %arg1: memref<8x64xf32, #tpu.memory_space<vmem>>, %arg2: memref<64x16xf32, #tpu.memory_space<vmem>>, %arg3: memref<1x16xf32, #tpu.memory_space<vmem>>, %arg4: memref<1x16xf32, #tpu.memory_space<vmem>>, %arg5: memref<1xf32, #tpu.memory_space<smem>>, %arg6: memref<1x8xf32, #tpu.memory_space<vmem>>) attributes {dimension_semantics = [#tpu.dimension_semantics<parallel>], iteration_bounds = array<i64: 1>, scalar_prefetch = 0 : i64, scratch_operands = 0 : i64, tpu.core_type = #tpu.core_type<tc>, window_params = [{transform_indices = @transform_0, window_bounds = array<i64: 8, 64>}, {pipeline_mode = #tpu.pipeline_mode<synchronous>, transform_indices = @transform_1, window_bounds = array<i64: 64, 16>}, {pipeline_mode = #tpu.pipeline_mode<synchronous>, transform_indices = @transform_2, window_bounds = array<i64: 1, 16>}, {pipeline_mode = #tpu.pipeline_mode<synchronous>, transform_indices = @transform_3, window_bounds = array<i64: 1, 16>}, {transform_indices = @transform_4, window_bounds = array<i64: 1>}, {transform_indices = @transform_5, window_bounds = array<i64: 1, 8>}]} {
    %c0 = arith.constant 0 : index
    %c0_0 = arith.constant 0 : index
    %0 = vector.load %arg1[%c0, %c0_0] : memref<8x64xf32, #tpu.memory_space<vmem>>, vector<8x64xf32>
    %c0_1 = arith.constant 0 : index
    %c0_2 = arith.constant 0 : index
    %1 = vector.load %arg2[%c0_1, %c0_2] : memref<64x16xf32, #tpu.memory_space<vmem>>, vector<64x16xf32>
    %cst = arith.constant dense<0.000000e+00> : vector<8x16xf32>
    %2 = tpu.matmul %0, %1, %cst {dimension_numbers = #tpu.dot_dimension_numbers<[1], [0], [0], [1], [0, 0, 1, 1], [], []>} : vector<8x64xf32>, vector<64x16xf32>, vector<8x16xf32> -> vector<8x16xf32>
    %c0_3 = arith.constant 0 : index
    %c0_4 = arith.constant 0 : index
    %3 = vector.load %arg3[%c0_3, %c0_4] : memref<1x16xf32, #tpu.memory_space<vmem>>, vector<1x16xf32>
    %4 = vector.broadcast %3 : vector<1x16xf32> to vector<8x16xf32>
    %5 = arith.addf %2, %4 : vector<8x16xf32>
    %cst_5 = arith.constant 0.000000e+00 : f32
    %6 = vector.broadcast %cst_5 : f32 to vector<8x16xf32>
    %7 = arith.maximumf %5, %6 : vector<8x16xf32>
    %c0_6 = arith.constant 0 : index
    %c0_7 = arith.constant 0 : index
    %8 = vector.load %arg4[%c0_6, %c0_7] : memref<1x16xf32, #tpu.memory_space<vmem>>, vector<1x16xf32>
    %9 = vector.broadcast %8 : vector<1x16xf32> to vector<8x16xf32>
    %10 = arith.mulf %7, %9 : vector<8x16xf32>
    %cst_8 = arith.constant dense<0.000000e+00> : vector<8xf32>
    %11 = vector.multi_reduction <add>, %10, %cst_8 [1] : vector<8x16xf32> to vector<8xf32>
    %12 = vector.shape_cast %11 : vector<8xf32> to vector<1x8xf32>
    %c0_9 = arith.constant 0 : index
    %13 = memref.load %arg5[%c0_9] : memref<1xf32, #tpu.memory_space<smem>>
    %14 = vector.broadcast %13 : f32 to vector<1x8xf32>
    %15 = arith.addf %12, %14 : vector<1x8xf32>
    %c0_10 = arith.constant 0 : index
    %c0_11 = arith.constant 0 : index
    %16 = vector.load %arg6[%c0_10, %c0_11] : memref<1x8xf32, #tpu.memory_space<vmem>>, vector<1x8xf32>
    tpu.vector_store %arg6[%c0_10, %c0_11], %15 {strides = array<i32>} : memref<1x8xf32, #tpu.memory_space<vmem>>, vector<1x8xf32>,
    return
  }
  func.func @transform_0(%arg0: i32) -> (i32, i32) {
    %c0_i32 = arith.constant 0 : i32
    %c0_i32_0 = arith.constant 0 : i32
    return %arg0, %c0_i32 : i32, i32
  }
  func.func @transform_1(%arg0: i32) -> (i32, i32) {
    %c0_i32 = arith.constant 0 : i32
    %c0_i32_0 = arith.constant 0 : i32
    %c0_i32_1 = arith.constant 0 : i32
    return %c0_i32, %c0_i32_0 : i32, i32
  }
  func.func @transform_2(%arg0: i32) -> (i32, i32) {
    %c0_i32 = arith.constant 0 : i32
    %c0_i32_0 = arith.constant 0 : i32
    %c0_i32_1 = arith.constant 0 : i32
    return %c0_i32, %c0_i32_0 : i32, i32
  }
  func.func @transform_3(%arg0: i32) -> (i32, i32) {
    %c0_i32 = arith.constant 0 : i32
    %c0_i32_0 = arith.constant 0 : i32
    %c0_i32_1 = arith.constant 0 : i32
    return %c0_i32, %c0_i32_0 : i32, i32
  }
  func.func @transform_4(%arg0: i32) -> i32 {
    %c0_i32 = arith.constant 0 : i32
    %c0_i32_0 = arith.constant 0 : i32
    return %c0_i32 : i32
  }
  func.func @transform_5(%arg0: i32) -> (i32, i32) {
    %c0_i32 = arith.constant 0 : i32
    %c0_i32_0 = arith.constant 0 : i32
    return %c0_i32, %arg0 : i32, i32
  }
}

</mosaic_0001>

<bundles_post_ra>
// kernel: tpu_custom_call.1
= control target key start
LH: loop header
LB: loop body
LE: loop exit
PB: predicated region body
PF: predicated region fallthrough
CT: control target
= control target key end

     0   :  { %v208_v1 = vmov 0.0   ;;  %vm209_vm0 = vmmov 0   ;;  %s280_s0 = inlined_call_operand.vmem [shape: f32[8,64], index: 0, kind: input, shape index: {}]   ;;  %s281_s1 = inlined_call_operand.vmem [shape: f32[64,16], index: 1, kind: input, shape index: {}]   ;;  %s282_s2 = inlined_call_operand.vmem [shape: f32[1,16], index: 2, kind: input, shape index: {}]   ;;  %s283_s3 = inlined_call_operand.vmem [shape: f32[1,16], index: 3, kind: input, shape index: {}]   ;;  %s284_s4 = inlined_call_operand.<no memory space> [shape: f32[1], index: 4, kind: input, shape index: {}]   ;;  %s285_s5 = inlined_call_operand.hbm [shape: f32[1,8], index: 5, kind: output, shape index: {}]  }
   0x1   :  { %v30_v0 = vld [vmem:[%s281_s1 + $0x38] sm:$0xff]  ;;  %164 = vmatprep.subr.mxu0 %v208_v1  ;;  %v29_v2 = vld [vmem:[%s281_s1 + $0x30] sm:$0xff]  ;;  %180 = vmatprep.mubr.msk.f32.mxu0 %vm209_vm0, %v208_v1  ;;  %v28_v3 = vld [vmem:[%s281_s1 + $0x28] sm:$0xff] }
   0x2   :  { %165 = vmatpush3.msra.mxu0 %v30_v0 }
   0x3   :  { %166 = vmatprep.subr.mxu0 %v208_v1 }
   0x4   :  { %11 = vsyncpa [#allocation4], 0  ;;  %167 = vmatpush3.msra.mxu0 %v29_v2  ;;  %v27_v4 = vld [vmem:[%s281_s1 + $0x20] sm:$0xff]  ;;  %v26_v5 = vld [vmem:[%s281_s1 + $0x18] sm:$0xff]  ;;  %vm38_vm1 = vcmask 523264   ;;  %vm121_vm2 = vcmask 130048   ;;  %v129_v18 = vlaneseq  ;;  %v126_v21 = vstv %s284_s4 }
   0x5   :  { %168 = vmatprep.subr.mxu0 %v208_v1  ;;  %v25_v6 = vld [vmem:[%s281_s1 + $0x10] sm:$0xff]  ;;  %v24_v7 = vld [vmem:[%s281_s1 + $0x8] sm:$0xff]  ;;  %v23_v8 = vld [vmem:[%s281_s1] sm:$0xff]  ;;  %vm136_vm3 = vcmask 57344  }
   0x6   :  { %169 = vmatpush3.msra.mxu0 %v28_v3  ;;  %v22_v9 = vld [vmem:[%s280_s0] sm:$0xff]  ;;  %v130_v19 = vand.u32 127, %v129_v18  ;;  %v132_v20 = vshrl.u32 %v129_v18, 7 }
   0x7   :  { %170 = vmatprep.subr.mxu0 %v208_v1  ;;  %v152_v10 = vld [vmem:[%s282_s2] ss:$0 sm:$0xff]  ;;  %s210_s2 = smov [#allocation3]  }
   0x8   :  { %171 = vmatpush3.msra.mxu0 %v27_v4  ;;  %v154_v14 = vld [vmem:[%s283_s3] ss:$0 sm:$0xff]  ;;  %v133_v22 = vsub.s32 %v130_v19, %v132_v20  ;;  %s144_s15 = sshll.u32 %s210_s2, 4  ;;  %s145_s15 = int_to_ptr.vmem [resolvable:$true] %s144_s15 }
   0x9   :  { %172 = vmatprep.subr.mxu0 %v208_v1  ;;  %s186_s3 = scalar_lea.vmem %s145_s15, 16  ;;  %s190_s16 = scalar_lea.vmem %s145_s15, 32 }
   0xa   :  { %173 = vmatpush3.msra.mxu0 %v26_v5  ;;  %p187_p0 = scmp.ne.s32.totalorder %s145_s15, %s186_s3  ;;  %p191_p1 = scmp.lt.s32.totalorder %s145_s15, %s145_s15 }
   0xb   :  { %174 = vmatprep.subr.mxu0 %v208_v1  ;;  %p192_p2 = scmp.lt.s32.totalorder %s190_s16, %s186_s3 }
   0xc   :  { %175 = vmatpush3.msra.mxu0 %v25_v6 }
   0xd   :  { %176 = vmatprep.subr.mxu0 %v208_v1  ;;  %p193_p3 = por %p192_p2, %p191_p1 }
   0xe   :  { %177 = vmatpush3.msra.mxu0 %v24_v7 }
   0xf   :  { %178 = vmatprep.subr.mxu0 %v208_v1  ;;  %p194_p4 = pnand %p193_p3, %p187_p0 }
  0x10   :  { %179 = vmatpush3.msra.mxu0 %v23_v8 }
  0x11   :  { %181 = vmatmul.mubr.msk.f32.vlgmr.msra.gmra.mxu0 %vm38_vm1, %v22_v9 }
  0xd1   :  { %v108_v11 = vpop.f32.mrf.mxu0 }
  0xd2   :  { %v109_v12 = vadd.f32 %v152_v10, %v108_v11 }
  0xd3   :  { %v182_v13 = vpop.f32.mrf.mxu0 }
  0xd4   :  { %v112_v15 = vmax.f32 %v109_v12, 0.0 }
  0xd6   :  { %v120_v16 = vmul.f32 %v154_v14, %v112_v15 }
  0xd8   :  { %v122_v17 = vsel %vm121_vm2, %v120_v16, 0.0 }
  0xd9   :  { %123 = vadd.xlane.f32.xlu0 %v122_v17 }
 0x162   :  { %v124_v23 = vpop.xlane.xlu0 %123 }
 0x163   :  { %v127_v24 = vadd.f32 %v126_v21, %v124_v23 }
 0x165   :  { %v134_v25 = vrot.slane %v127_v24, %v133_v22 }
 0x167   :  { %137 = vst.msk [vmem:[#allocation3] sm:$0x1] %vm136_vm3, %v134_v25 }
 0x168   :  { %197 = shalt.err (!%p194_p4)
}
 0x169   :  { %147 = dma.vmem_to_hbm [thread:$0]  %s145_s15, 16, %s285_s5, [#allocation4]  }
 0x16a   :  { %206 = dma.done.wait [#allocation4], 16  }
 0x16b   :  { %207 = vsyncadd [#allocation4], 4294967280 }
 0x16c   :  { %151 = vsyncpa [#allocation4], 1 }

</bundles_post_ra>
